<compile_context>
chip_gen: v7x
topology: tpu7x:2x2x1
jax: 0.10.0
libtpu: 0.0.40
codegen_flags: <defaults>
</compile_context>

<pallas_src>
from functools import partial

import numpy as np
import jax
import jax.numpy as jnp
from jax.experimental import pallas as pl
from jax.experimental.pallas import tpu as pltpu


# ------------------------------- helpers -------------------------------------

def _round_up(x, m):
    return ((x + m - 1) // m) * m


def _pick_tile(dim, pref, align):
    """Largest tile <= pref that is a multiple of `align` and divides dim,
    falling back to the full dim (always legal: block == full array dim)."""
    if dim <= pref:
        return dim
    t = (pref // align) * align
    while t >= align:
        if dim % t == 0:
            return t
        t -= align
    return dim


# --------------------------- tiled Pallas GEMM --------------------------------

def _matmul_kernel(a_ref, b_ref, o_ref, acc_ref, *, pre_silu_a):
    @pl.when(pl.program_id(2) == 0)
    def _init():
        acc_ref[...] = jnp.zeros_like(acc_ref)

    a = a_ref[...]
    if pre_silu_a:
        # mp_silu fused as a GEMM prologue:  silu(x)/0.596
        af = a.astype(jnp.float32)
        af = af * pl.reciprocal(1.0 + jnp.exp(-af), approx=True) \
                * np.float32(1.0 / 0.596)
        a = af.astype(a_ref.dtype)

    acc_ref[...] += jnp.dot(a, b_ref[...], preferred_element_type=jnp.float32)

    @pl.when(pl.program_id(2) == pl.num_programs(2) - 1)
    def _fin():
        o_ref[...] = acc_ref[...].astype(o_ref.dtype)


@partial(jax.jit, static_argnames=('pre_silu_a',))
def pallas_matmul(a, b, pre_silu_a=False):
    """C = [silu?(A)] @ B, bf16 MXU operands, f32 accumulation/output."""
    M, K = a.shape
    K2, N = b.shape
    assert K == K2
    # Tiles sized comfortably inside v7x's 64 MiB VMEM (also fine on v5e/v6e):
    # 2 inputs x 2 buffers x tile + f32 acc  <<  scoped limit.
    tm = min(256, _round_up(M, 16))
    tn = min(256, _round_up(N, 128))
    tk = min(512, _round_up(K, 128))
    Mp = _round_up(M, tm)
    Np = _round_up(N, tn)
    Kp = _round_up(K, tk)
    a_p = jnp.pad(a.astype(jnp.bfloat16), ((0, Mp - M), (0, Kp - K)))
    b_p = jnp.pad(b.astype(jnp.bfloat16), ((0, Kp - K), (0, Np - N)))

    out = pl.pallas_call(
        partial(_matmul_kernel, pre_silu_a=pre_silu_a),
        out_shape=jax.ShapeDtypeStruct((Mp, Np), jnp.float32),
        grid_spec=pltpu.PrefetchScalarGridSpec(
            num_scalar_prefetch=0,
            grid=(Mp // tm, Np // tn, Kp // tk),
            in_specs=[pl.BlockSpec((tm, tk), lambda i, j, k: (i, k)),
                      pl.BlockSpec((tk, tn), lambda i, j, k: (k, j))],
            out_specs=pl.BlockSpec((tm, tn), lambda i, j, k: (i, j)),
            scratch_shapes=[pltpu.VMEM((tm, tn), jnp.float32)]),
        compiler_params=pltpu.CompilerParams(
            dimension_semantics=("parallel", "parallel", "arbitrary"),
            vmem_limit_bytes=48 * 1024 * 1024),
    )(a_p, b_p)
    return out[:M, :N]


# --------------------------- elementwise kernels -------------------------------

def _mp_silu_kernel(x_ref, o_ref):
    x = x_ref[...]
    o_ref[...] = x * pl.reciprocal(1.0 + jnp.exp(-x), approx=True) \
                   * np.float32(1.0 / 0.596)


@jax.jit
def mp_silu(x):
    shape = x.shape
    x2 = x.reshape(shape[0], -1).astype(jnp.float32)
    R, C = x2.shape
    tr = _pick_tile(R, 256, 8)
    tc = _pick_tile(C, 2048, 128)
    spec = pl.BlockSpec((tr, tc), lambda i, j: (i, j))
    y = pl.pallas_call(
        _mp_silu_kernel,
        out_shape=jax.ShapeDtypeStruct((R, C), jnp.float32),
        grid=(R // tr, C // tc),
        in_specs=[spec], out_specs=spec,
        compiler_params=pltpu.CompilerParams(
            dimension_semantics=("parallel", "parallel"),
            vmem_limit_bytes=32 * 1024 * 1024),
    )(x2)
    return y.reshape(shape)


def _pixel_norm_kernel(x_ref, o_ref):
    x = x_ref[...]                       # (1, C, tl)
    c = x.shape[1]
    n = jnp.sqrt(jnp.sum(x * x, axis=1, keepdims=True))
    o_ref[...] = x * pl.reciprocal(
        np.float32(1e-4) + n * np.float32(1.0 / np.sqrt(c)), approx=True)


@jax.jit
def pixel_norm(x):
    # normalize(x, dim=1): per-(n,h,w) L2 norm over channels.
    N, C, H, W = x.shape
    HW = H * W
    x3 = x.reshape(N, C, HW).astype(jnp.float32)
    tl = _pick_tile(HW, 512, 128)
    spec = pl.BlockSpec((1, C, tl), lambda i, j: (i, 0, j))
    y = pl.pallas_call(
        _pixel_norm_kernel,
        out_shape=jax.ShapeDtypeStruct((N, C, HW), jnp.float32),
        grid=(N, HW // tl),
        in_specs=[spec], out_specs=spec,
        compiler_params=pltpu.CompilerParams(
            dimension_semantics=("parallel", "parallel"),
            vmem_limit_bytes=32 * 1024 * 1024),
    )(x3)
    return y.reshape(N, C, H, W)


def _precond_combine_kernel(x_ref, fx_ref, cs_ref, co_ref, o_ref):
    o_ref[...] = cs_ref[...] * x_ref[...] + co_ref[...] * fx_ref[...]


@jax.jit
def precond_combine(x, fx, c_skip, c_out):
    N = x.shape[0]
    x2 = x.reshape(N, -1).astype(jnp.float32)
    fx2 = fx.reshape(N, -1).astype(jnp.float32)
    cols = x2.shape[1]
    cs = c_skip.reshape(N, 1).astype(jnp.float32)
    co = c_out.reshape(N, 1).astype(jnp.float32)
    tc = _pick_tile(cols, 2048, 128)
    dspec = pl.BlockSpec((N, tc), lambda j: (0, j))
    sspec = pl.BlockSpec((N, 1), lambda j: (0, 0))
    y = pl.pallas_call(
        _precond_combine_kernel,
        out_shape=jax.ShapeDtypeStruct((N, cols), jnp.float32),
        grid=(cols // tc,),
        in_specs=[dspec, dspec, sspec, sspec],
        out_specs=dspec,
        compiler_params=pltpu.CompilerParams(
            dimension_semantics=("parallel",),
            vmem_limit_bytes=32 * 1024 * 1024),
    )(x2, fx2, cs, co)
    return y.reshape(x.shape)


# ------------------------------ attention --------------------------------------

def _attn_kernel(q_ref, k_ref, v_ref, o_ref):
    # Block = (1, heads, cph, L): all heads of one sample per grid step.
    q = q_ref[0].astype(jnp.float32)     # (H, c, L)
    k = k_ref[0].astype(jnp.float32)
    v = v_ref[0].astype(jnp.float32)
    c = q.shape[1]
    inv_sqrt_c = np.float32(1.0 / np.sqrt(c))

    def pnorm(t):                         # pixel-norm over the channel axis
        n = jnp.sqrt(jnp.sum(t * t, axis=1, keepdims=True))
        return t * pl.reciprocal(np.float32(1e-4) + n * inv_sqrt_c, approx=True)

    q = pnorm(q)
    k = pnorm(k)
    v = pnorm(v)

    # TODO(synk): flash-style online softmax over K/V blocks for large L so
    # the (L, L) score matrix never has to fit v7x's 64 MiB VMEM.
    s = jnp.einsum('hcq,hck->hqk',
                   q.astype(jnp.bfloat16),
                   (k * inv_sqrt_c).astype(jnp.bfloat16),
                   preferred_element_type=jnp.float32)
    s = s - jnp.max(s, axis=-1, keepdims=True)
    p = jnp.exp(s)
    p = p * pl.reciprocal(jnp.sum(p, axis=-1, keepdims=True), approx=True)
    o_ref[0] = jnp.einsum('hck,hqk->hcq',
                          v.astype(jnp.bfloat16), p.astype(jnp.bfloat16),
                          preferred_element_type=jnp.float32)


@jax.jit
def pallas_attention(q, k, v):
    N, heads, cph, L = q.shape
    spec = pl.BlockSpec((1, heads, cph, L), lambda i: (i, 0, 0, 0))
    return pl.pallas_call(
        _attn_kernel,
        out_shape=jax.ShapeDtypeStruct((N, heads, cph, L), jnp.float32),
        grid=(N,),
        in_specs=[spec, spec, spec],
        out_specs=spec,
        compiler_params=pltpu.CompilerParams(
            dimension_semantics=("parallel",),
            vmem_limit_bytes=48 * 1024 * 1024),
    )(q.astype(jnp.float32), k.astype(jnp.float32), v.astype(jnp.float32))


# ------------------------------ JAX glue ---------------------------------------

def normalize_weight(w, eps=1e-4):
    # EDM2 normalize(): per-output-channel L2 normalization with eps.
    axes = tuple(range(1, w.ndim))
    norm = jnp.sqrt(jnp.sum(jnp.square(w.astype(jnp.float32)),
                            axis=axes, keepdims=True))
    fan_in = int(np.prod(w.shape[1:]))
    return w / (eps + norm * (1.0 / np.sqrt(fan_in)))


def mp_linear(x, w, gain=1.0):
    # MPConv with kernel=[]:  x @ w.T   (w: (Cout, Cin))
    w = normalize_weight(w)
    fan_in = w.shape[1]
    w = w * (gain / np.sqrt(fan_in))
    return pallas_matmul(x.astype(jnp.float32), w.T)


def mp_conv2d(x, w, gain=1.0, pre_silu=False):
    # MPConv with kernel [kh,kw]; stride 1, padding = kw//2 (same as torch).
    # im2col + GEMM oriented as (N*H*W, fan_in) @ (fan_in, Cout) so the big
    # dimension is M and the output stays lane-dense; optional mp_silu is
    # applied inside the GEMM prologue.
    # TODO(synk): eliminate the im2col materialization with a direct 9-tap
    # conv Pallas kernel (shifted pl.ds loads + per-tap accumulation).
    w = normalize_weight(w)
    Cout, Cin, kh, kw = w.shape
    fan_in = Cin * kh * kw
    w2 = (w * (gain / np.sqrt(fan_in))).reshape(Cout, fan_in)

    N, _, H, W = x.shape
    pad = kw // 2
    xp = jnp.pad(x, ((0, 0), (0, 0), (pad, pad), (pad, pad)))
    taps = [xp[:, :, dy:dy + H, dx:dx + W]
            for dy in range(kh) for dx in range(kw)]      # each (N, Cin, H, W)
    patches = jnp.stack(taps, axis=2)                      # (N, Cin, kh*kw, H, W)
    patches = patches.transpose(0, 3, 4, 1, 2).reshape(N * H * W, fan_in)
    out = pallas_matmul(patches, w2.T, pre_silu_a=pre_silu)  # (NHW, Cout)
    return out.reshape(N, H, W, Cout).transpose(0, 3, 1, 2)


def mp_conv(x, w, gain=1.0):
    return mp_linear(x, w, gain) if w.ndim == 2 else mp_conv2d(x, w, gain)


def mp_fourier(x, freqs, phases):
    return jnp.cos(jnp.outer(x.astype(jnp.float32), freqs) + phases) * np.sqrt(2.0)


def mp_sum(a, b, t=0.5):
    return (a + t * (b - a)) / np.sqrt((1 - t) ** 2 + t ** 2)


def mp_cat(a, b, t=0.5):
    Na, Nb = a.shape[1], b.shape[1]
    C = np.sqrt((Na + Nb) / ((1 - t) ** 2 + t ** 2))
    wa = C / np.sqrt(Na) * (1 - t)
    wb = C / np.sqrt(Nb) * t
    return jnp.concatenate([wa * a, wb * b], axis=1)


def resample(x, mode):
    if mode == 'keep':
        return x
    N, C, H, W = x.shape
    if mode == 'down':   # depthwise 2x2 mean, stride 2  (filter [1,1])
        return x.reshape(N, C, H // 2, 2, W // 2, 2).mean(axis=(3, 5))
    # 'up': conv_transpose with 2x2 ones, stride 2 == nearest-neighbor upsample
    return jnp.repeat(jnp.repeat(x, 2, axis=2), 2, axis=3)


# ------------------------------- Block -----------------------------------------

def init_block(randn, cin, cout, cemb, flavor, resample_mode='keep',
               attention=False, channels_per_head=64, res_balance=0.3,
               attn_balance=0.3, clip_act=256.0):
    num_heads = cout // channels_per_head if attention else 0
    return {
        'flavor': flavor, 'resample_mode': resample_mode,
        'num_heads': num_heads, 'res_balance': res_balance,
        'attn_balance': attn_balance, 'clip_act': clip_act,
        'out_channels': cout,
        'emb_gain': jnp.float32(0.1),  # torch inits to 0; nonzero to exercise path
        'conv_res0': randn((cout, cout if flavor == 'enc' else cin, 3, 3)),
        'emb_linear': randn((cout, cemb)),
        'conv_res1': randn((cout, cout, 3, 3)),
        'conv_skip': randn((cout, cin, 1, 1)) if cin != cout else None,
        'attn_qkv': randn((cout * 3, cout, 1, 1)) if num_heads != 0 else None,
        'attn_proj': randn((cout, cout, 1, 1)) if num_heads != 0 else None,
    }


def block_forward(p, x, emb):
    # Main branch.
    x = resample(x, p['resample_mode'])
    if p['flavor'] == 'enc':
        if p['conv_skip'] is not None:
            x = mp_conv2d(x, p['conv_skip'])
        x = pixel_norm(x)

    # Residual branch (mp_silu fused into the conv GEMM prologue).
    y = mp_conv2d(x, p['conv_res0'], pre_silu=True)
    c = mp_linear(emb, p['emb_linear'], gain=p['emb_gain']) + 1.0   # (N, Cout)
    y = mp_conv2d(y * c[:, :, None, None], p['conv_res1'], pre_silu=True)

    if p['flavor'] == 'dec' and p['conv_skip'] is not None:
        x = mp_conv2d(x, p['conv_skip'])
    x = mp_sum(x, y, t=p['res_balance'])

    # Self-attention.
    if p['num_heads'] != 0:
        N, C, H, W = x.shape
        heads = p['num_heads']
        cph = C // heads
        L = H * W
        y = mp_conv2d(x, p['attn_qkv'])                 # (N, 3C, H, W)
        y = y.reshape(N, heads, cph, 3, L)              # matches torch reshape
        q = y[:, :, :, 0, :]
        k = y[:, :, :, 1, :]
        v = y[:, :, :, 2, :]
        a = pallas_attention(q, k, v)                   # (N, heads, cph, L)
        y = mp_conv2d(a.reshape(N, C, H, W), p['attn_proj'])
        x = mp_sum(x, y, t=p['attn_balance'])

    return jnp.clip(x, -p['clip_act'], p['clip_act'])


# -------------------------------- UNet ------------------------------------------

def init_unet(key, audio_channels, model_channels=128, channel_mult=(1, 2, 4),
              channel_mult_noise=None, channel_mult_emb=None, num_blocks=1,
              attn_levels=(2,), concat_balance=0.5, **block_kwargs):
    keys = iter(jax.random.split(key, 512))

    def randn(shape):
        return jax.random.normal(next(keys), shape, jnp.float32)

    cblock = [model_channels * m for m in channel_mult]
    cnoise = (model_channels * channel_mult_noise
              if channel_mult_noise is not None else cblock[0])
    cemb = (model_channels * channel_mult_emb
            if channel_mult_emb is not None else max(cblock))

    params = {
        'concat_balance': concat_balance,
        'out_gain': jnp.float32(1.0),   # torch inits to 0 (would zero F_x)
        'emb_fourier_freqs': 2 * np.pi * randn((cnoise,)),
        'emb_fourier_phases': 2 * np.pi * jax.random.uniform(
            next(keys), (cnoise,), jnp.float32),
        'emb_noise': randn((cemb, cnoise)),
    }

    enc = []
    cout = audio_channels + 1
    for level, channels in enumerate(cblock):
        if level == 0:
            cin, cout = cout, channels
            enc.append((f'lvl{level}_conv',
                        {'kind': 'conv', 'w': randn((cout, cin, 3, 3)),
                         'out_channels': cout}))
        else:
            enc.append((f'lvl{level}_down',
                        {'kind': 'block',
                         'p': init_block(randn, cout, cout, cemb, 'enc',
                                         resample_mode='down', **block_kwargs),
                         'out_channels': cout}))
        for idx in range(num_blocks):
            cin, cout = cout, channels
            enc.append((f'lvl{level}_block{idx}',
                        {'kind': 'block',
                         'p': init_block(randn, cin, cout, cemb, 'enc',
                                         attention=level in attn_levels,
                                         **block_kwargs),
                         'out_channels': cout}))

    dec = []
    skips = [m['out_channels'] for _, m in enc]
    for level, channels in reversed(list(enumerate(cblock))):
        if level == len(cblock) - 1:
            dec.append((f'lvl{level}_in0',
                        {'kind': 'block',
                         'p': init_block(randn, cout, cout, cemb, 'dec',
                                         attention=True, **block_kwargs)}))
            dec.append((f'lvl{level}_in1',
                        {'kind': 'block',
                         'p': init_block(randn, cout, cout, cemb, 'dec',
                                         **block_kwargs)}))
        else:
            dec.append((f'lvl{level}_up',
                        {'kind': 'block',
                         'p': init_block(randn, cout, cout, cemb, 'dec',
                                         resample_mode='up', **block_kwargs)}))
        for idx in range(num_blocks + 1):
            cin = cout + skips.pop()
            cout = channels
            dec.append((f'lvl{level}_block{idx}',
                        {'kind': 'block',
                         'p': init_block(randn, cin, cout, cemb, 'dec',
                                         attention=level in attn_levels,
                                         **block_kwargs)}))

    params['enc'] = enc
    params['dec'] = dec
    params['out_conv'] = randn((audio_channels, cout, 3, 3))
    return params


def unet_forward(params, x, noise_labels):
    emb = mp_fourier(noise_labels, params['emb_fourier_freqs'],
                     params['emb_fourier_phases'])
    emb = mp_silu(mp_linear(emb, params['emb_noise']))

    x = jnp.concatenate([x, jnp.ones_like(x[:, :1])], axis=1)
    skips = []
    for name, m in params['enc']:
        if 'conv' in name:
            x = mp_conv2d(x, m['w'])
        else:
            x = block_forward(m['p'], x, emb)
        skips.append(x)
    for name, m in params['dec']:
        if 'block' in name:
            x = mp_cat(x, skips.pop(), t=params['concat_balance'])
        x = block_forward(m['p'], x, emb)
    return mp_conv2d(x, params['out_conv'], gain=params['out_gain'])


# ------------------------------- Precond ----------------------------------------

def init_precond(key, freq_resolution, audio_channels, sigma_data=0.5,
                 logvar_channels=128, **unet_kwargs):
    k1, k2, k3, k4 = jax.random.split(key, 4)
    return {
        'freq_resolution': freq_resolution,
        'sigma_data': sigma_data,
        'unet': init_unet(k1, audio_channels=audio_channels, **unet_kwargs),
        'logvar_fourier_freqs': 2 * np.pi * jax.random.normal(
            k2, (logvar_channels,), jnp.float32),
        'logvar_fourier_phases': 2 * np.pi * jax.random.uniform(
            k3, (logvar_channels,), jnp.float32),
        'logvar_linear': jax.random.normal(k4, (1, logvar_channels), jnp.float32),
    }


def precond_forward(params, x, sigma, return_logvar=False):
    sd = params['sigma_data']
    x = x.astype(jnp.float32)
    sigma = sigma.astype(jnp.float32).reshape(-1, 1, 1, 1)
    # use_fp16 only triggers on CUDA in the reference module; TPU path keeps
    # f32 activations and feeds bf16 to the MXU inside the GEMM kernels.
    c_skip = sd ** 2 / (sigma ** 2 + sd ** 2)
    c_out = sigma * sd / jnp.sqrt(sigma ** 2 + sd ** 2)
    c_in = 1.0 / jnp.sqrt(sd ** 2 + sigma ** 2)
    c_noise = jnp.log(sigma.reshape(-1)) / 4.0

    x_in = (c_in * x).astype(jnp.float32)
    F_x = unet_forward(params['unet'], x_in, c_noise)
    D_x = precond_combine(x, F_x, c_skip, c_out)

    if return_logvar:
        lv = mp_fourier(c_noise, params['logvar_fourier_freqs'],
                        params['logvar_fourier_phases'])
        logvar = mp_linear(lv, params['logvar_linear']).reshape(-1, 1, 1, 1)
        return D_x, logvar
    return D_x


# --------------------------------- main ------------------------------------------

if __name__ == "__main__":
    key = jax.random.PRNGKey(0)
    kp, kx, ks = jax.random.split(key, 3)

    audio_channels = 2
    params = init_precond(
        kp, freq_resolution=16, audio_channels=audio_channels,
        sigma_data=0.5, logvar_channels=32,
        # small UNet config: cblock=[16,32], attention at level 1 (2 heads)
        model_channels=16, channel_mult=[1, 2], num_blocks=1,
        attn_levels=[1], channels_per_head=16)

    x = jax.random.normal(kx, (2, audio_channels, 16, 16), jnp.float32)
    sigma = jnp.exp(0.5 * jax.random.normal(ks, (2,), jnp.float32))

    D_x, logvar = precond_forward(params, x, sigma, return_logvar=True)
    jax.block_until_ready(D_x)
    jax.block_until_ready(logvar)

    assert D_x.shape == x.shape and D_x.dtype == jnp.float32
    assert logvar.shape == (2, 1, 1, 1)
    assert bool(jnp.all(jnp.isfinite(D_x))) and bool(jnp.all(jnp.isfinite(logvar)))
    print("KERNEL_OK")
</pallas_src>

<mosaic_0001>
module attributes {stable_mosaic.version = 11 : i64} {
  func.func @_matmul_kernel(%arg0: i32, %arg1: i32, %arg2: i32, %arg3: memref<16x128xbf16, #tpu.memory_space<vmem>>, %arg4: memref<128x128xbf16, #tpu.memory_space<vmem>>, %arg5: memref<16x128xf32, #tpu.memory_space<vmem>>, %arg6: memref<16x128xf32, #tpu.memory_space<vmem>>) attributes {dimension_semantics = [#tpu.dimension_semantics<parallel>, #tpu.dimension_semantics<parallel>, #tpu.dimension_semantics<arbitrary>], iteration_bounds = array<i64: 1, 1, 1>, scalar_prefetch = 0 : i64, scratch_operands = 1 : i64, tpu.core_type = #tpu.core_type<tc>, window_params = [{transform_indices = @transform_0, window_bounds = array<i64: 16, 128>}, {transform_indices = @transform_1, window_bounds = array<i64: 128, 128>}, {transform_indices = @transform_2, window_bounds = array<i64: 16, 128>}]} {
    %c0_i32 = arith.constant 0 : i32
    %0 = arith.cmpi eq, %arg2, %c0_i32 : i32
    %1 = arith.extui %0 : i1 to i32
    %c0_i32_0 = arith.constant 0 : i32
    %2 = arith.cmpi ne, %1, %c0_i32_0 : i32
    scf.if %2 {
      %cst_10 = arith.constant 0.000000e+00 : f32
      %12 = vector.broadcast %cst_10 : f32 to vector<16x128xf32>
      %c0_11 = arith.constant 0 : index
      %c0_12 = arith.constant 0 : index
      %13 = vector.load %arg6[%c0_11, %c0_12] : memref<16x128xf32, #tpu.memory_space<vmem>>, vector<16x128xf32>
      tpu.vector_store %arg6[%c0_11, %c0_12], %12 {strides = array<i32>} : memref<16x128xf32, #tpu.memory_space<vmem>>, vector<16x128xf32>,
    } else {
    }
    %c0 = arith.constant 0 : index
    %c0_1 = arith.constant 0 : index
    %3 = vector.load %arg3[%c0, %c0_1] : memref<16x128xbf16, #tpu.memory_space<vmem>>, vector<16x128xbf16>
    %c0_2 = arith.constant 0 : index
    %c0_3 = arith.constant 0 : index
    %4 = vector.load %arg6[%c0_2, %c0_3] : memref<16x128xf32, #tpu.memory_space<vmem>>, vector<16x128xf32>
    %c0_4 = arith.constant 0 : index
    %c0_5 = arith.constant 0 : index
    %5 = vector.load %arg4[%c0_4, %c0_5] : memref<128x128xbf16, #tpu.memory_space<vmem>>, vector<128x128xbf16>
    %cst = arith.constant dense<0.000000e+00> : vector<16x128xf32>
    %6 = tpu.matmul %3, %5, %cst {dimension_numbers = #tpu.dot_dimension_numbers<[1], [0], [0], [1], [0, 0, 1, 1], [], []>} : vector<16x128xbf16>, vector<128x128xbf16>, vector<16x128xf32> -> vector<16x128xf32>
    %7 = arith.addf %4, %6 : vector<16x128xf32>
    %c0_6 = arith.constant 0 : index
    %c0_7 = arith.constant 0 : index
    %8 = vector.load %arg6[%c0_6, %c0_7] : memref<16x128xf32, #tpu.memory_space<vmem>>, vector<16x128xf32>
    tpu.vector_store %arg6[%c0_6, %c0_7], %7 {strides = array<i32>} : memref<16x128xf32, #tpu.memory_space<vmem>>, vector<16x128xf32>,
    %c0_i32_8 = arith.constant 0 : i32
    %9 = arith.cmpi eq, %arg2, %c0_i32_8 : i32
    %10 = arith.extui %9 : i1 to i32
    %c0_i32_9 = arith.constant 0 : i32
    %11 = arith.cmpi ne, %10, %c0_i32_9 : i32
    scf.if %11 {
      %c0_10 = arith.constant 0 : index
      %c0_11 = arith.constant 0 : index
      %12 = vector.load %arg6[%c0_10, %c0_11] : memref<16x128xf32, #tpu.memory_space<vmem>>, vector<16x128xf32>
      %c0_12 = arith.constant 0 : index
      %c0_13 = arith.constant 0 : index
      %13 = vector.load %arg5[%c0_12, %c0_13] : memref<16x128xf32, #tpu.memory_space<vmem>>, vector<16x128xf32>
      tpu.vector_store %arg5[%c0_12, %c0_13], %12 {strides = array<i32>} : memref<16x128xf32, #tpu.memory_space<vmem>>, vector<16x128xf32>,
    } else {
    }
    return
  }
  func.func @transform_0(%arg0: i32, %arg1: i32, %arg2: i32) -> (i32, i32) {
    %c0_i32 = arith.constant 0 : i32
    return %arg0, %arg2 : i32, i32
  }
  func.func @transform_1(%arg0: i32, %arg1: i32, %arg2: i32) -> (i32, i32) {
    %c0_i32 = arith.constant 0 : i32
    return %arg2, %arg1 : i32, i32
  }
  func.func @transform_2(%arg0: i32, %arg1: i32, %arg2: i32) -> (i32, i32) {
    %c0_i32 = arith.constant 0 : i32
    return %arg0, %arg1 : i32, i32
  }
}

</mosaic_0001>

<bundles_post_ra>
// kernel: pallas_matmul.1
= control target key start
LH: loop header
LB: loop body
LE: loop exit
PB: predicated region body
PF: predicated region fallthrough
CT: control target
= control target key end

     0   :  { %v197_v0 = vmov 0.0   ;;  %vm198_vm0 = vmmov 0   ;;  %s247_s1 = inlined_call_operand.vmem [shape: bf16[128,128], index: 1, kind: input, shape index: {}]   ;;  %s248_s0 = inlined_call_operand.vmem [shape: bf16[16,128], index: 0, kind: input, shape index: {}]   ;;  %s249_s2 = inlined_call_operand.vmem [shape: f32[16,128], index: 2, kind: output, shape index: {}]  }
   0x1   :  { %166 = vmatprep.subr.bf16.mxu0 %v197_v0  ;;  %v188_v1 = vld [vmem:[%s247_s1] sm:$0xff]   ;;  %182 = vmatprep.mubr.msk.bf16.mxu0 %vm198_vm0, %v197_v0  ;;  %v189_v2 = vld [vmem:[%s247_s1 + $0x8] sm:$0xff]   ;;  %v190_v3 = vld [vmem:[%s247_s1 + $0x10] sm:$0xff]  }
   0x2   :  { %167 = vmatpush3.bf16.msra.mxu0 %v188_v1  ;;  %v191_v4 = vld [vmem:[%s247_s1 + $0x18] sm:$0xff]   ;;  %v192_v5 = vld [vmem:[%s247_s1 + $0x20] sm:$0xff]   ;;  %v193_v6 = vld [vmem:[%s247_s1 + $0x28] sm:$0xff]  }
   0x3   :  { %168 = vmatprep.subr.bf16.mxu0 %v197_v0  ;;  %v194_v7 = vld [vmem:[%s247_s1 + $0x30] sm:$0xff]   ;;  %v195_v8 = vld [vmem:[%s247_s1 + $0x38] sm:$0xff]   ;;  %v196_v9 = vld [vmem:[%s248_s0] sm:$0xff]  }
   0x6   :  { %169 = vmatpush3.bf16.msra.mxu0 %v189_v2 }
   0x7   :  { %170 = vmatprep.subr.bf16.mxu0 %v197_v0 }
   0xa   :  { %171 = vmatpush3.bf16.msra.mxu0 %v190_v3 }
   0xb   :  { %172 = vmatprep.subr.bf16.mxu0 %v197_v0 }
   0xe   :  { %173 = vmatpush3.bf16.msra.mxu0 %v191_v4 }
   0xf   :  { %174 = vmatprep.subr.bf16.mxu0 %v197_v0 }
  0x12   :  { %175 = vmatpush3.bf16.msra.mxu0 %v192_v5 }
  0x13   :  { %176 = vmatprep.subr.bf16.mxu0 %v197_v0 }
  0x16   :  { %177 = vmatpush3.bf16.msra.mxu0 %v193_v6 }
  0x17   :  { %178 = vmatprep.subr.bf16.mxu0 %v197_v0 }
  0x1a   :  { %179 = vmatpush3.bf16.msra.mxu0 %v194_v7 }
  0x1b   :  { %180 = vmatprep.subr.bf16.mxu0 %v197_v0 }
  0x1e   :  { %181 = vmatpush3.bf16.msra.mxu0 %v195_v8 }
  0x21   :  { %183 = vmatmul.mubr.bf16.vlgmr.msra.gmra.mrb[0].mxu0 %v196_v9 }
  0xf4   :  { %v126_v10 = vpop.f32.mrb[0].mxu0 }
  0xf5   :  { %142 = vst [vmem:[%s249_s2] sm:$0xff] %v126_v10  ;;  %v184_v11 = vpop.f32.mrb[1].mxu0 }
  0xf6   :  { %v129_v12 = vpop.f32.mrb[2].mxu0 }
  0xf7   :  { %143 = vst [vmem:[%s249_s2 + $0x8] sm:$0xff] %v129_v12  ;;  %v185_v13 = vpop.f32.mrb[3].mxu0 }

</bundles_post_ra>
